<compile_context>
chip_gen: v5e
topology: v5e:2x2
jax: 0.10.0
libtpu: 0.0.40
codegen_flags: <defaults>
</compile_context>

<pallas_src>
import math

import jax
import jax.numpy as jnp
from jax.experimental import pallas as pl
from jax.experimental.pallas import tpu as pltpu


def _round_up(x, m):
    return ((x + m - 1) // m) * m


def _make_kernel(seq_len, compute_dtype):
    """Kernel closure over the (static) sequence length and matmul dtype."""

    def kernel(x_ref, w1_ref, b1_ref, w2_ref, b2_ref, v_ref, bf_ref, out_ref):
        # x_ref : (C_in, M)     input, M = block_b * L flattened batch*time (lanes)
        # w1_ref: (3, H, C_in)  layer-1 conv taps, transposed for (H, M) activations
        # b1_ref: (H, 1)
        # w2_ref: (3, H, H)     layer-2 conv taps (transposed), compute_dtype
        # b2_ref: (H, 1)
        # v_ref : (3, H)        layer-3 conv taps folded with fc: v[k] = w3[k] @ wf^T
        # bf_ref: (1, 1)        folded bias: b3 @ wf^T + bf
        # out_ref: (1, M)       sigmoid(blink logits), lane-dense store
        c_in, m = x_ref.shape

        # Per-sequence boundary masks over the flattened batch*time lane axis.
        # Single-row (1, M); jnp.where broadcasts them over the (H, M) slabs.
        # They also kill cross-sequence leakage introduced by rolling over the
        # flattened axis.
        pos = jax.lax.broadcasted_iota(jnp.int32, (1, m), 1) % seq_len
        first = pos == 0                 # t == 0     within each sequence
        last = pos == (seq_len - 1)      # t == L - 1 within each sequence

        def shift_prev(a):               # a[:, t] -> a[:, t-1], zero at t == 0
            return jnp.where(first, 0.0, pltpu.roll(a, 1, 1))

        def shift_next(a):               # a[:, t] -> a[:, t+1], zero at t == L-1
            return jnp.where(last, 0.0, pltpu.roll(a, m - 1, 1))

        # ---- layer 1: Conv1d(C_in -> H, k=3, p=1).
        x = x_ref[...]                                        # (C_in, M) f32
        x_taps = (shift_prev(x), x, shift_next(x))
        if c_in < 4:
            # Tiny C_in (module default is 1): unrolled broadcast multiply-add
            # on the VPU -- avoids a degenerate K=C_in MXU matmul.
            w1 = w1_ref[...]                                  # (3, H, C_in)
            h = None
            for k in range(3):
                for c in range(c_in):
                    term = w1[k, :, c:c + 1] * x_taps[k][c:c + 1, :]   # (H, M)
                    h = term if h is None else h + term
        else:
            h = (jnp.dot(w1_ref[0], x_taps[0], preferred_element_type=jnp.float32)
                 + jnp.dot(w1_ref[1], x_taps[1], preferred_element_type=jnp.float32)
                 + jnp.dot(w1_ref[2], x_taps[2], preferred_element_type=jnp.float32))
        h = h + b1_ref[...]                                   # (H, M) f32

        # ---- layer 2: Conv1d(H -> H, k=3, p=1) as three accumulating MXU dots
        # (no lane concat; shifts are lane rolls on the XLU).
        h = h.astype(compute_dtype)
        h2 = (jnp.dot(w2_ref[0], shift_prev(h), preferred_element_type=jnp.float32)
              + jnp.dot(w2_ref[1], h, preferred_element_type=jnp.float32)
              + jnp.dot(w2_ref[2], shift_next(h), preferred_element_type=jnp.float32))
        h2 = h2 + b2_ref[...]                                 # (H, M) f32

        # ---- layer 3 conv folded with fc(H -> 1):
        #   logit[t] = <h2[t-1], v0> + <h2[t], v1> + <h2[t+1], v2> + bf_eff
        # One tiny (3,H)@(H,M) dot gives all three per-tap projections
        # lane-dense; combine them with cheap (1, M) lane rolls + masks.
        proj = jnp.dot(v_ref[...], h2.astype(compute_dtype),
                       preferred_element_type=jnp.float32)    # (3, M)
        logits = (shift_prev(proj[0:1, :]) + proj[1:2, :]
                  + shift_next(proj[2:3, :]) + bf_ref[...])   # (1, M)
        out_ref[...] = jax.nn.sigmoid(logits)

    return kernel


def tcn_forward(x_ncl, params, *, block_b=None, use_bf16=False):
    """x_ncl: (B, C_in, L) float32 (PyTorch Conv1d layout). Returns (B, L)."""
    w1, b1, w2, b2, w3, b3, wf, bf = params
    B, C_in, L = x_ncl.shape
    H = w1.shape[-1]
    compute_dtype = jnp.bfloat16 if use_bf16 else jnp.float32

    # block_b granularity that keeps block_b*L a multiple of 128 (lane-dense
    # input/output blocks satisfy the (8,128) BlockSpec rule for every nb).
    unit = 128 // math.gcd(L, 128)
    if block_b is None:
        # ~1024 flattened rows per grid step (amortizes the ~0.35us step
        # overhead and fills the MXU), but keep >= 2 grid steps when the
        # problem is big enough so both v7x TensorCores get a "parallel" block.
        block_b = unit * max(1, round(1024 / (unit * L)))
        if block_b >= B:
            half = _round_up(pl.cdiv(B, 2), unit)
            if half < B and half * L >= 256:
                block_b = half                       # 2 grid steps
            else:
                block_b = _round_up(B, unit)         # single (lane-aligned) step
    else:
        block_b = _round_up(block_b, unit)
    nb = pl.cdiv(B, block_b)
    Bp = nb * block_b
    mblk = block_b * L

    # Lane-dense input: channels-first, batch*time flattened onto lanes.
    x_t = jnp.transpose(x_ncl, (1, 0, 2))            # (C_in, B, L)
    if Bp != B:
        x_t = jnp.pad(x_t, ((0, 0), (0, Bp - B), (0, 0)))
    x_t = x_t.reshape(C_in, Bp * L)

    # Weights transposed for the (H, M) activation layout.
    w1t = jnp.transpose(w1, (0, 2, 1))                              # (3, H, C_in)
    b1t = jnp.transpose(b1)                                         # (H, 1)
    w2t = jnp.transpose(w2, (0, 2, 1)).astype(compute_dtype)        # (3, H, H)
    b2t = jnp.transpose(b2)                                         # (H, 1)
    # Fold fc(H -> 1) into conv layer 3: v[k, c] = sum_o w3[k, c, o] * wf[0, o]
    v = (w3 @ wf[0]).astype(compute_dtype)                          # (3, H)
    bf_eff = (jnp.sum(b3[0] * wf[0]) + bf[0, 0]).reshape(1, 1)      # (1, 1)

    kernel = _make_kernel(L, compute_dtype)

    # VMEM budget sized from the actual working set (activation slabs + blocks),
    # with generous margin; a few MiB, far under v5e/v6e 128 MiB and v7x 64 MiB.
    slab = _round_up(H, 8) * _round_up(mblk, 128) * 4
    vmem_limit = int(min(60 * 2**20, max(8 * 2**20, 16 * slab + (2 << 20))))

    grid_spec = pltpu.PrefetchScalarGridSpec(
        num_scalar_prefetch=0,
        grid=(nb,),
        in_specs=[
            pl.BlockSpec((C_in, mblk), lambda b: (0, b)),
            pl.BlockSpec((3, H, C_in), lambda b: (0, 0, 0)),
            pl.BlockSpec((H, 1), lambda b: (0, 0)),
            pl.BlockSpec((3, H, H), lambda b: (0, 0, 0)),
            pl.BlockSpec((H, 1), lambda b: (0, 0)),
            pl.BlockSpec((3, H), lambda b: (0, 0)),
            pl.BlockSpec((1, 1), lambda b: (0, 0)),
        ],
        out_specs=pl.BlockSpec((1, mblk), lambda b: (0, b)),
    )

    out = pl.pallas_call(
        kernel,
        out_shape=jax.ShapeDtypeStruct((1, Bp * L), jnp.float32),
        grid_spec=grid_spec,
        compiler_params=pltpu.CompilerParams(
            dimension_semantics=("parallel",),
            vmem_limit_bytes=vmem_limit,
        ),
    )(x_t, w1t, b1t, w2t, b2t, v, bf_eff)

    return out[0].reshape(Bp, L)[:B]


def init_params(key, input_size=1, hidden_size=64, num_layers=3):
    """Deterministic synthetic parameters. Conv taps stored as (3, C_in, C_out)."""
    keys = jax.random.split(key, 2 * num_layers + 2)
    params = []
    in_ch = input_size
    for i in range(num_layers):
        w = 0.1 * jax.random.normal(keys[2 * i], (3, in_ch, hidden_size),
                                    dtype=jnp.float32)
        b = 0.1 * jax.random.normal(keys[2 * i + 1], (1, hidden_size),
                                    dtype=jnp.float32)
        params += [w, b]
        in_ch = hidden_size
    wf = 0.1 * jax.random.normal(keys[-2], (1, hidden_size), dtype=jnp.float32)
    bf = 0.1 * jax.random.normal(keys[-1], (1, 1), dtype=jnp.float32)
    params += [wf, bf]
    return tuple(params)


def tcn_reference(x_ncl, params):
    """Pure-JAX mirror of the PyTorch forward (stacked Conv1d k=3 p=1, fc, sigmoid)."""
    w1, b1, w2, b2, w3, b3, wf, bf = params
    h = jnp.transpose(x_ncl, (0, 2, 1))                             # (B, L, C_in)

    def conv(h, w, b):
        z = jnp.zeros_like(h[:, :1, :])
        h_prev = jnp.concatenate([z, h[:, :-1, :]], axis=1)
        h_next = jnp.concatenate([h[:, 1:, :], z], axis=1)
        return (jnp.einsum("blc,co->blo", h_prev, w[0])
                + jnp.einsum("blc,co->blo", h, w[1])
                + jnp.einsum("blc,co->blo", h_next, w[2]) + b)

    h = conv(h, w1, b1)
    h = conv(h, w2, b2)
    h = conv(h, w3, b3)
    logits = jnp.einsum("blh,oh->blo", h, wf) + bf                  # fc: (1,H),(1,1)
    return jax.nn.sigmoid(logits)[..., 0]


if __name__ == "__main__":
    key = jax.random.PRNGKey(0)
    k_x, k_p = jax.random.split(key)

    # Module defaults: input_size=1, hidden_size=64, num_layers=3.
    B, C_in, L, H = 2, 1, 16, 64
    x = jax.random.normal(k_x, (B, C_in, L), dtype=jnp.float32)     # PyTorch NCL
    params = init_params(k_p, input_size=C_in, hidden_size=H, num_layers=3)

    out = tcn_forward(x, params)
    out = jax.block_until_ready(out)
    ref = tcn_reference(x, params)
    assert out.shape == (B, L)
    assert jnp.allclose(out, ref, atol=1e-5, rtol=1e-5), "mismatch vs reference"

    # Second check: exercise the multi-block grid path (nb > 1) with padding.
    B2 = 10
    x2 = jax.random.normal(jax.random.PRNGKey(1), (B2, C_in, L), dtype=jnp.float32)
    out2 = jax.block_until_ready(tcn_forward(x2, params, block_b=8))   # nb = 2
    ref2 = tcn_reference(x2, params)
    assert out2.shape == (B2, L)
    assert jnp.allclose(out2, ref2, atol=1e-5, rtol=1e-5), "mismatch vs reference (nb>1)"

    print("KERNEL_OK")
</pallas_src>

<mosaic_0001>
module attributes {stable_mosaic.version = 11 : i64} {
  func.func @kernel(%arg0: i32, %arg1: memref<1x128xf32, #tpu.memory_space<vmem>>, %arg2: memref<3x64x1xf32, #tpu.memory_space<vmem>>, %arg3: memref<64x1xf32, #tpu.memory_space<vmem>>, %arg4: memref<3x64x64xf32, #tpu.memory_space<vmem>>, %arg5: memref<64x1xf32, #tpu.memory_space<vmem>>, %arg6: memref<3x64xf32, #tpu.memory_space<vmem>>, %arg7: memref<1x1xf32, #tpu.memory_space<vmem>>, %arg8: memref<1x128xf32, #tpu.memory_space<vmem>>) attributes {dimension_semantics = [#tpu.dimension_semantics<parallel>], iteration_bounds = array<i64: 1>, scalar_prefetch = 0 : i64, scratch_operands = 0 : i64, tpu.core_type = #tpu.core_type<tc>, window_params = [{transform_indices = @transform_0, window_bounds = array<i64: 1, 128>}, {pipeline_mode = #tpu.pipeline_mode<synchronous>, transform_indices = @transform_1, window_bounds = array<i64: 3, 64, 1>}, {pipeline_mode = #tpu.pipeline_mode<synchronous>, transform_indices = @transform_2, window_bounds = array<i64: 64, 1>}, {pipeline_mode = #tpu.pipeline_mode<synchronous>, transform_indices = @transform_3, window_bounds = array<i64: 3, 64, 64>}, {pipeline_mode = #tpu.pipeline_mode<synchronous>, transform_indices = @transform_4, window_bounds = array<i64: 64, 1>}, {pipeline_mode = #tpu.pipeline_mode<synchronous>, transform_indices = @transform_5, window_bounds = array<i64: 3, 64>}, {pipeline_mode = #tpu.pipeline_mode<synchronous>, transform_indices = @transform_6, window_bounds = array<i64: 1, 1>}, {transform_indices = @transform_7, window_bounds = array<i64: 1, 128>}]} {
    %0 = tpu.iota {dimensions = array<i32: 1>} : vector<1x128xi32>
    %c16_i32 = arith.constant 16 : i32
    %c0_i32 = arith.constant 0 : i32
    %1 = arith.cmpi eq, %c16_i32, %c0_i32 : i32
    %c1_i32 = arith.constant 1 : i32
    %2 = arith.select %1, %c1_i32, %c16_i32 : i32
    %3 = vector.broadcast %2 : i32 to vector<1x128xi32>
    %4 = arith.remsi %0, %3 : vector<1x128xi32>
    %c0_i32_0 = arith.constant 0 : i32
    %5 = vector.broadcast %c0_i32_0 : i32 to vector<1x128xi32>
    %6 = arith.cmpi ne, %4, %5 : vector<1x128xi32>
    %c0_i32_1 = arith.constant 0 : i32
    %7 = vector.broadcast %c0_i32_1 : i32 to vector<1x128xi32>
    %8 = arith.cmpi slt, %4, %7 : vector<1x128xi32>
    %c0_i32_2 = arith.constant 0 : i32
    %9 = arith.cmpi slt, %2, %c0_i32_2 : i32
    %10 = vector.broadcast %9 : i1 to vector<1x128xi1>
    %11 = vector.broadcast %10 : vector<1x128xi1> to vector<1x128xi1>
    %12 = arith.xori %8, %11 : vector<1x128xi1>
    %13 = arith.andi %12, %6 : vector<1x128xi1>
    %14 = vector.broadcast %2 : i32 to vector<1x128xi32>
    %15 = arith.addi %4, %14 : vector<1x128xi32>
    %16 = arith.select %13, %15, %4 : vector<1x128xi1>, vector<1x128xi32>
    %c0_i32_3 = arith.constant 0 : i32
    %17 = vector.broadcast %c0_i32_3 : i32 to vector<1x128xi32>
    %18 = arith.cmpi eq, %16, %17 : vector<1x128xi32>
    %c15_i32 = arith.constant 15 : i32
    %19 = vector.broadcast %c15_i32 : i32 to vector<1x128xi32>
    %20 = arith.cmpi eq, %16, %19 : vector<1x128xi32>
    %c0 = arith.constant 0 : index
    %c0_4 = arith.constant 0 : index
    %21 = vector.load %arg1[%c0, %c0_4] : memref<1x128xf32, #tpu.memory_space<vmem>>, vector<1x128xf32>
    %c1_i32_5 = arith.constant 1 : i32
    %22 = tpu.dynamic_rotate %21 by %c1_i32_5 dim 1 : vector<1x128xf32>, i32 -> vector<1x128xf32>
    %cst = arith.constant 0.000000e+00 : f32
    %23 = vector.broadcast %cst : f32 to vector<1x128xf32>
    %24 = arith.select %18, %23, %22 : vector<1x128xi1>, vector<1x128xf32>
    %c127_i32 = arith.constant 127 : i32
    %25 = tpu.dynamic_rotate %21 by %c127_i32 dim 1 : vector<1x128xf32>, i32 -> vector<1x128xf32>
    %cst_6 = arith.constant 0.000000e+00 : f32
    %26 = vector.broadcast %cst_6 : f32 to vector<1x128xf32>
    %27 = arith.select %20, %26, %25 : vector<1x128xi1>, vector<1x128xf32>
    %c0_7 = arith.constant 0 : index
    %c0_8 = arith.constant 0 : index
    %c0_9 = arith.constant 0 : index
    %28 = vector.load %arg2[%c0_7, %c0_8, %c0_9] : memref<3x64x1xf32, #tpu.memory_space<vmem>>, vector<3x64x1xf32>
    %29 = vector.extract_strided_slice %28 {offsets = [0, 0, 0], sizes = [1, 64, 1], strides = [1, 1, 1]} : vector<3x64x1xf32> to vector<1x64x1xf32>
    %30 = vector.shape_cast %29 : vector<1x64x1xf32> to vector<64x1xf32>
    %31 = vector.broadcast %30 : vector<64x1xf32> to vector<64x128xf32>
    %32 = vector.broadcast %24 : vector<1x128xf32> to vector<64x128xf32>
    %33 = arith.mulf %31, %32 : vector<64x128xf32>
    %34 = vector.extract_strided_slice %28 {offsets = [1, 0, 0], sizes = [1, 64, 1], strides = [1, 1, 1]} : vector<3x64x1xf32> to vector<1x64x1xf32>
    %35 = vector.shape_cast %34 : vector<1x64x1xf32> to vector<64x1xf32>
    %36 = vector.broadcast %35 : vector<64x1xf32> to vector<64x128xf32>
    %37 = vector.broadcast %21 : vector<1x128xf32> to vector<64x128xf32>
    %38 = arith.mulf %36, %37 : vector<64x128xf32>
    %39 = arith.addf %33, %38 : vector<64x128xf32>
    %40 = vector.extract_strided_slice %28 {offsets = [2, 0, 0], sizes = [1, 64, 1], strides = [1, 1, 1]} : vector<3x64x1xf32> to vector<1x64x1xf32>
    %41 = vector.shape_cast %40 : vector<1x64x1xf32> to vector<64x1xf32>
    %42 = vector.broadcast %41 : vector<64x1xf32> to vector<64x128xf32>
    %43 = vector.broadcast %27 : vector<1x128xf32> to vector<64x128xf32>
    %44 = arith.mulf %42, %43 : vector<64x128xf32>
    %45 = arith.addf %39, %44 : vector<64x128xf32>
    %c0_10 = arith.constant 0 : index
    %c0_11 = arith.constant 0 : index
    %46 = vector.load %arg3[%c0_10, %c0_11] : memref<64x1xf32, #tpu.memory_space<vmem>>, vector<64x1xf32>
    %47 = vector.broadcast %46 : vector<64x1xf32> to vector<64x128xf32>
    %48 = arith.addf %45, %47 : vector<64x128xf32>
    %c0_12 = arith.constant 0 : index
    %c0_13 = arith.constant 0 : index
    %c0_14 = arith.constant 0 : index
    %49 = vector.load %arg4[%c0_12, %c0_13, %c0_14] : memref<3x64x64xf32, #tpu.memory_space<vmem>>, vector<1x64x64xf32>
    %50 = vector.shape_cast %49 : vector<1x64x64xf32> to vector<64x64xf32>
    %c1_i32_15 = arith.constant 1 : i32
    %51 = tpu.dynamic_rotate %48 by %c1_i32_15 dim 1 : vector<64x128xf32>, i32 -> vector<64x128xf32>
    %cst_16 = arith.constant 0.000000e+00 : f32
    %52 = vector.shape_cast %18 : vector<1x128xi1> to vector<1x128xi1>
    %53 = vector.broadcast %52 : vector<1x128xi1> to vector<64x128xi1>
    %54 = vector.broadcast %cst_16 : f32 to vector<64x128xf32>
    %55 = arith.select %53, %54, %51 : vector<64x128xi1>, vector<64x128xf32>
    %cst_17 = arith.constant dense<0.000000e+00> : vector<64x128xf32>
    %56 = tpu.matmul %50, %55, %cst_17 {dimension_numbers = #tpu.dot_dimension_numbers<[1], [0], [0], [1], [0, 0, 1, 1], [], []>} : vector<64x64xf32>, vector<64x128xf32>, vector<64x128xf32> -> vector<64x128xf32>
    %c1 = arith.constant 1 : index
    %c0_18 = arith.constant 0 : index
    %c0_19 = arith.constant 0 : index
    %57 = vector.load %arg4[%c1, %c0_18, %c0_19] : memref<3x64x64xf32, #tpu.memory_space<vmem>>, vector<1x64x64xf32>
    %58 = vector.shape_cast %57 : vector<1x64x64xf32> to vector<64x64xf32>
    %cst_20 = arith.constant dense<0.000000e+00> : vector<64x128xf32>
    %59 = tpu.matmul %58, %48, %cst_20 {dimension_numbers = #tpu.dot_dimension_numbers<[1], [0], [0], [1], [0, 0, 1, 1], [], []>} : vector<64x64xf32>, vector<64x128xf32>, vector<64x128xf32> -> vector<64x128xf32>
    %60 = arith.addf %56, %59 : vector<64x128xf32>
    %c2 = arith.constant 2 : index
    %c0_21 = arith.constant 0 : index
    %c0_22 = arith.constant 0 : index
    %61 = vector.load %arg4[%c2, %c0_21, %c0_22] : memref<3x64x64xf32, #tpu.memory_space<vmem>>, vector<1x64x64xf32>
    %62 = vector.shape_cast %61 : vector<1x64x64xf32> to vector<64x64xf32>
    %c127_i32_23 = arith.constant 127 : i32
    %63 = tpu.dynamic_rotate %48 by %c127_i32_23 dim 1 : vector<64x128xf32>, i32 -> vector<64x128xf32>
    %cst_24 = arith.constant 0.000000e+00 : f32
    %64 = vector.shape_cast %20 : vector<1x128xi1> to vector<1x128xi1>
    %65 = vector.broadcast %64 : vector<1x128xi1> to vector<64x128xi1>
    %66 = vector.broadcast %cst_24 : f32 to vector<64x128xf32>
    %67 = arith.select %65, %66, %63 : vector<64x128xi1>, vector<64x128xf32>
    %cst_25 = arith.constant dense<0.000000e+00> : vector<64x128xf32>
    %68 = tpu.matmul %62, %67, %cst_25 {dimension_numbers = #tpu.dot_dimension_numbers<[1], [0], [0], [1], [0, 0, 1, 1], [], []>} : vector<64x64xf32>, vector<64x128xf32>, vector<64x128xf32> -> vector<64x128xf32>
    %69 = arith.addf %60, %68 : vector<64x128xf32>
    %c0_26 = arith.constant 0 : index
    %c0_27 = arith.constant 0 : index
    %70 = vector.load %arg5[%c0_26, %c0_27] : memref<64x1xf32, #tpu.memory_space<vmem>>, vector<64x1xf32>
    %71 = vector.broadcast %70 : vector<64x1xf32> to vector<64x128xf32>
    %72 = arith.addf %69, %71 : vector<64x128xf32>
    %c0_28 = arith.constant 0 : index
    %c0_29 = arith.constant 0 : index
    %73 = vector.load %arg6[%c0_28, %c0_29] : memref<3x64xf32, #tpu.memory_space<vmem>>, vector<3x64xf32>
    %cst_30 = arith.constant dense<0.000000e+00> : vector<3x128xf32>
    %74 = tpu.matmul %73, %72, %cst_30 {dimension_numbers = #tpu.dot_dimension_numbers<[1], [0], [0], [1], [0, 0, 1, 1], [], []>} : vector<3x64xf32>, vector<64x128xf32>, vector<3x128xf32> -> vector<3x128xf32>
    %75 = vector.extract_strided_slice %74 {offsets = [0, 0], sizes = [1, 128], strides = [1, 1]} : vector<3x128xf32> to vector<1x128xf32>
    %c1_i32_31 = arith.constant 1 : i32
    %76 = tpu.dynamic_rotate %75 by %c1_i32_31 dim 1 : vector<1x128xf32>, i32 -> vector<1x128xf32>
    %cst_32 = arith.constant 0.000000e+00 : f32
    %77 = vector.broadcast %cst_32 : f32 to vector<1x128xf32>
    %78 = arith.select %18, %77, %76 : vector<1x128xi1>, vector<1x128xf32>
    %79 = vector.extract_strided_slice %74 {offsets = [1, 0], sizes = [1, 128], strides = [1, 1]} : vector<3x128xf32> to vector<1x128xf32>
    %80 = arith.addf %78, %79 : vector<1x128xf32>
    %81 = vector.extract_strided_slice %74 {offsets = [2, 0], sizes = [1, 128], strides = [1, 1]} : vector<3x128xf32> to vector<1x128xf32>
    %c127_i32_33 = arith.constant 127 : i32
    %82 = tpu.dynamic_rotate %81 by %c127_i32_33 dim 1 : vector<1x128xf32>, i32 -> vector<1x128xf32>
    %cst_34 = arith.constant 0.000000e+00 : f32
    %83 = vector.broadcast %cst_34 : f32 to vector<1x128xf32>
    %84 = arith.select %20, %83, %82 : vector<1x128xi1>, vector<1x128xf32>
    %85 = arith.addf %80, %84 : vector<1x128xf32>
    %c0_35 = arith.constant 0 : index
    %c0_36 = arith.constant 0 : index
    %86 = vector.load %arg7[%c0_35, %c0_36] : memref<1x1xf32, #tpu.memory_space<vmem>>, vector<1x1xf32>
    %87 = vector.broadcast %86 : vector<1x1xf32> to vector<1x128xf32>
    %88 = arith.addf %85, %87 : vector<1x128xf32>
    %89 = arith.negf %88 : vector<1x128xf32>
    %90 = math.exp %89 : vector<1x128xf32>
    %cst_37 = arith.constant 1.000000e+00 : f32
    %91 = vector.broadcast %cst_37 : f32 to vector<1x128xf32>
    %92 = arith.addf %91, %90 : vector<1x128xf32>
    %93 = arith.divf %91, %92 : vector<1x128xf32>
    %c0_38 = arith.constant 0 : index
    %c0_39 = arith.constant 0 : index
    %94 = vector.load %arg8[%c0_38, %c0_39] : memref<1x128xf32, #tpu.memory_space<vmem>>, vector<1x128xf32>
    tpu.vector_store %arg8[%c0_38, %c0_39], %93 {strides = array<i32>} : memref<1x128xf32, #tpu.memory_space<vmem>>, vector<1x128xf32>,
    return
  }
  func.func @transform_0(%arg0: i32) -> (i32, i32) {
    %c0_i32 = arith.constant 0 : i32
    %c0_i32_0 = arith.constant 0 : i32
    return %c0_i32, %arg0 : i32, i32
  }
  func.func @transform_1(%arg0: i32) -> (i32, i32, i32) {
    %c0_i32 = arith.constant 0 : i32
    %c0_i32_0 = arith.constant 0 : i32
    %c0_i32_1 = arith.constant 0 : i32
    %c0_i32_2 = arith.constant 0 : i32
    return %c0_i32, %c0_i32_0, %c0_i32_1 : i32, i32, i32
  }
  func.func @transform_2(%arg0: i32) -> (i32, i32) {
    %c0_i32 = arith.constant 0 : i32
    %c0_i32_0 = arith.constant 0 : i32
    %c0_i32_1 = arith.constant 0 : i32
    return %c0_i32, %c0_i32_0 : i32, i32
  }
  func.func @transform_3(%arg0: i32) -> (i32, i32, i32) {
    %c0_i32 = arith.constant 0 : i32
    %c0_i32_0 = arith.constant 0 : i32
    %c0_i32_1 = arith.constant 0 : i32
    %c0_i32_2 = arith.constant 0 : i32
    return %c0_i32, %c0_i32_0, %c0_i32_1 : i32, i32, i32
  }
  func.func @transform_4(%arg0: i32) -> (i32, i32) {
    %c0_i32 = arith.constant 0 : i32
    %c0_i32_0 = arith.constant 0 : i32
    %c0_i32_1 = arith.constant 0 : i32
    return %c0_i32, %c0_i32_0 : i32, i32
  }
  func.func @transform_5(%arg0: i32) -> (i32, i32) {
    %c0_i32 = arith.constant 0 : i32
    %c0_i32_0 = arith.constant 0 : i32
    %c0_i32_1 = arith.constant 0 : i32
    return %c0_i32, %c0_i32_0 : i32, i32
  }
  func.func @transform_6(%arg0: i32) -> (i32, i32) {
    %c0_i32 = arith.constant 0 : i32
    %c0_i32_0 = arith.constant 0 : i32
    %c0_i32_1 = arith.constant 0 : i32
    return %c0_i32, %c0_i32_0 : i32, i32
  }
  func.func @transform_7(%arg0: i32) -> (i32, i32) {
    %c0_i32 = arith.constant 0 : i32
    %c0_i32_0 = arith.constant 0 : i32
    return %c0_i32, %arg0 : i32, i32
  }
}

</mosaic_0001>

<bundles_post_ra>
// kernel: tpu_custom_call.1
= control target key start
LH: loop header
LB: loop body
LE: loop exit
PB: predicated region body
PF: predicated region fallthrough
CT: control target
= control target key end

     0   :  { %s1214_s0 = inlined_call_operand.vmem [shape: f32[1,128], index: 0, kind: input, shape index: {}]   ;;  %s1215_s1 = inlined_call_operand.vmem [shape: f32[3,64,1], index: 1, kind: input, shape index: {}]   ;;  %s1216_s2 = inlined_call_operand.vmem [shape: f32[64,1], index: 2, kind: input, shape index: {}]   ;;  %s1217_s3 = inlined_call_operand.vmem [shape: f32[3,64,64], index: 3, kind: input, shape index: {}]   ;;  %s1218_s4 = inlined_call_operand.vmem [shape: f32[64,1], index: 4, kind: input, shape index: {}]   ;;  %s1219_s5 = inlined_call_operand.vmem [shape: f32[3,64], index: 5, kind: input, shape index: {}]   ;;  %s1220_s6 = inlined_call_operand.<no memory space> [shape: f32[1,1], index: 6, kind: input, shape index: {}]   ;;  %s1221_s7 = inlined_call_operand.hbm [shape: f32[1,128], index: 7, kind: output, shape index: {}]  }
   0x1   :  { %v12_v0 = vstv %s1220_s6 }
   0x2   :  { %13 = vst [vmem:[#allocation2] sm:$0x1] %v12_v0 }
   0x3   :  { %v45_v1 = vld [vmem:[%s1214_s0] sm:$0x1]  ;;  %v828_v2 = vmov 0   ;;  %v59_v3 = vld [vmem:[%s1215_s1 + $0x38] sm:$0xff]  ;;  %v58_v4 = vld [vmem:[%s1215_s1 + $0x30] sm:$0xff]  ;;  %s829_s9 = smov 1  }
   0x4   :  { %795 = vset.pattern.permute.xlu2 %v828_v2  ;;  %794 = vset.pattern.permute.xlu1 %v828_v2 }
   0x5   :  { %46 = vrot.lane.b32.xlu0 %v45_v1, %s829_s9  ;;  %113 = vperm.xlu1 %794, %v59_v3  }
   0x6   :  { %108 = vperm.xlu2 %795, %v58_v4   ;;  %796 = vset.pattern.permute.xlu0 %v828_v2 }
   0x7   :  { %14 = vsyncpa [#allocation4], 0  ;;  %v67_v5 = vld [vmem:[%s1215_s1 + $0x78] sm:$0xff]  ;;  %v66_v6 = vld [vmem:[%s1215_s1 + $0x70] sm:$0xff]  ;;  %s830_s13 = smov 127   ;;  %v29_v38 = vlaneseq  ;;  %vm340_vm4 = vcmask 523264  }
   0x8   :  { %v75_v7 = vld [vmem:[%s1215_s1 + $0xb8] sm:$0xff]  ;;  %v57_v8 = vld [vmem:[%s1215_s1 + $0x28] sm:$0xff]  ;;  %v64_v10 = vld [vmem:[%s1215_s1 + $0x60] sm:$0xff]  ;;  %s707_s17 = sshll.u32 %s1221_s7, 4  ;;  %s708_s17 = int_to_ptr.hbm [resolvable:$true] %s707_s17 }
   0x9   :  { %v65_v9 = vld [vmem:[%s1215_s1 + $0x68] sm:$0xff]  ;;  %v74_v11 = vld [vmem:[%s1215_s1 + $0xb0] sm:$0xff]  ;;  %v56_v12 = vld [vmem:[%s1215_s1 + $0x20] sm:$0xff]  ;;  %v30_v39 = vand.u32 127, %v29_v38 }
   0xa   :  { %v55_v13 = vld [vmem:[%s1215_s1 + $0x18] sm:$0xff]  ;;  %v73_v14 = vld [vmem:[%s1215_s1 + $0xa8] sm:$0xff]  ;;  %v247_v16 = vld [vmem:[%s1216_s2 + $0x30] sm:$0xff] }
   0xb   :  { %v248_v15 = vld [vmem:[%s1216_s2 + $0x38] sm:$0xff]  ;;  %v72_v18 = vld [vmem:[%s1215_s1 + $0xa0] sm:$0xff]  ;;  %v54_v20 = vld [vmem:[%s1215_s1 + $0x10] sm:$0xff]  ;;  %v35_v42 = vand.u32 15, %v30_v39 }
   0xc   :  { %v63_v17 = vld [vmem:[%s1215_s1 + $0x58] sm:$0xff]  ;;  %v62_v21 = vld [vmem:[%s1215_s1 + $0x50] sm:$0xff]  ;;  %v61_v22 = vld [vmem:[%s1215_s1 + $0x48] sm:$0xff] }
   0xd   :  { %49 = vrot.lane.b32.xlu0 %v45_v1, %s830_s13  ;;  %162 = vperm.xlu1 %794, %v67_v5   ;;  %v71_v19 = vld [vmem:[%s1215_s1 + $0x98] sm:$0xff]  ;;  %v246_v23 = vld [vmem:[%s1216_s2 + $0x28] sm:$0xff]  ;;  %v52_v25 = vld [vmem:[%s1215_s1] sm:$0xff]  ;;  %vm976_vm0 = vcmp.eq.s32.totalorder %v35_v42, 0  ;;  %vm982_vm1 = vcmp.eq.s32.totalorder %v35_v42, 15 }
   0xe   :  { %157 = vperm.xlu2 %795, %v66_v6   ;;  %v53_v24 = vld [vmem:[%s1215_s1 + $0x8] sm:$0xff]  ;;  %v70_v26 = vld [vmem:[%s1215_s1 + $0x90] sm:$0xff]  ;;  %v245_v27 = vld [vmem:[%s1216_s2 + $0x20] sm:$0xff] }
   0xf   :  { %v244_v28 = vld [vmem:[%s1216_s2 + $0x18] sm:$0xff]  ;;  %v60_v29 = vld [vmem:[%s1215_s1 + $0x40] sm:$0xff]  ;;  %v69_v30 = vld [vmem:[%s1215_s1 + $0x88] sm:$0xff] }
  0x10   :  { %v242_v31 = vld [vmem:[%s1216_s2 + $0x8] sm:$0xff]  ;;  %v68_v32 = vld [vmem:[%s1215_s1 + $0x80] sm:$0xff]  ;;  %v243_v33 = vld [vmem:[%s1216_s2 + $0x10] sm:$0xff] }
  0x11   :  { %v241_v34 = vld [vmem:[%s1216_s2] sm:$0xff]  ;;  %vm1057_vm2 = vmneg %vm982_vm1 }
  0x12   :  { %v989_v50 = vld [vmem:[%s1214_s0] ss:$0 sm:$0xff]  ;;  %vm1071_vm3 = vmneg %vm976_vm0 }
  0x15   :  { %221 = vperm.xlu0 %796, %v75_v7   ;;  %103 = vperm.xlu1 %794, %v57_v8  }
  0x16   :  { %152 = vperm.xlu2 %795, %v65_v9  }
  0x1d   :  { %147 = vperm.xlu0 %796, %v64_v10   ;;  %216 = vperm.xlu1 %794, %v74_v11  }
  0x1e   :  { %98 = vperm.xlu2 %795, %v56_v12  }
  0x25   :  { %93 = vperm.xlu0 %796, %v55_v13   ;;  %211 = vperm.xlu1 %794, %v73_v14  }
  0x26   :  { %286 = vperm.xlu2 %795, %v248_v15  }
  0x2d   :  { %281 = vperm.xlu0 %796, %v247_v16   ;;  %142 = vperm.xlu1 %794, %v63_v17  }
  0x2e   :  { %206 = vperm.xlu2 %795, %v72_v18  }
  0x35   :  { %201 = vperm.xlu0 %796, %v71_v19   ;;  %88 = vperm.xlu1 %794, %v54_v20  }
  0x36   :  { %137 = vperm.xlu2 %795, %v62_v21  }
  0x3d   :  { %132 = vperm.xlu0 %796, %v61_v22   ;;  %276 = vperm.xlu1 %794, %v246_v23  }
  0x3e   :  { %83 = vperm.xlu2 %795, %v53_v24  }
  0x45   :  { %78 = vperm.xlu0 %796, %v52_v25   ;;  %196 = vperm.xlu1 %794, %v70_v26  }
  0x46   :  { %271 = vperm.xlu2 %795, %v245_v27  }
  0x4d   :  { %266 = vperm.xlu0 %796, %v244_v28   ;;  %127 = vperm.xlu1 %794, %v60_v29  }
  0x4e   :  { %191 = vperm.xlu2 %795, %v69_v30  }
  0x55   :  { %256 = vperm.xlu0 %796, %v242_v31   ;;  %186 = vperm.xlu1 %794, %v68_v32  }
  0x56   :  { %261 = vperm.xlu2 %795, %v243_v33  }
  0x5d   :  { %251 = vperm.xlu1 %794, %v241_v34  }
  0x60   :  { %v109_v35 = vpop.permute.xlu2 %108 }
  0x68   :  { %v158_v36 = vpop.permute.xlu2 %157 }
  0x69   :  { %v174_v5 = vmul.f32 %v989_v50, %v158_v36 }
  0x70   :  { %v153_v37 = vpop.permute.xlu2 %152 }
  0x71   :  { %v173_v23 = vmul.f32 %v989_v50, %v153_v37 }
  0x77   :  { %v47_v40 = vpop.permute.xlu0 %46  ;;  %v114_v41 = vpop.permute.xlu1 %113 }
  0x78   :  { %v99_v43 = vpop.permute.xlu2 %98  ;;  %v48_v45 = vsel %vm976_vm0, 0.0, %v47_v40 }
  0x79   :  { %v991_v51 = vperm.slane %v48_v45, 0 }
  0x7b   :  { %v124_v54 = vmul.f32 %v991_v51, %v114_v41  ;;  %v123_v7 = vmul.f32 %v991_v51, %v109_v35  ;;  %v121_v8 = vmul.f32 %v991_v51, %v99_v43 }
  0x7d   :  { %v182_v11 = vadd.f32 %v174_v5, %v123_v7  ;;  %v583_v5 = vld [vmem:[%s1218_s4 + $0x20] sm:$0xff] }
  0x7f   :  { %v50_v46 = vpop.permute.xlu0 %49  ;;  %v163_v47 = vpop.permute.xlu1 %162 }
  0x80   :  { %v287_v49 = vpop.permute.xlu2 %286  ;;  %v51_v52 = vsel %vm982_vm1, 0.0, %v50_v46  ;;  %v175_v53 = vmul.f32 %v989_v50, %v163_v47 }
  0x81   :  { %v997_v55 = vperm.slane %v51_v52, 0 }
  0x82   :  { %v183_v58 = vadd.f32 %v175_v53, %v124_v54 }
  0x87   :  { %v222_v56 = vpop.permute.xlu0 %221  ;;  %v104_v57 = vpop.permute.xlu1 %103 }
  0x88   :  { %v232_v59 = vmul.f32 %v997_v55, %v222_v56  ;;  %v207_v60 = vpop.permute.xlu2 %206  ;;  %v122_v22 = vmul.f32 %v991_v51, %v104_v57 }
  0x89   :  { %v229_v12 = vmul.f32 %v997_v55, %v207_v60 }
  0x8a   :  { %v240_v61 = vadd.f32 %v232_v59, %v183_v58  ;;  %v181_v25 = vadd.f32 %v173_v23, %v122_v22 }
  0x8c   :  { %v296_v62 = vadd.f32 %v287_v49, %v240_v61 }
  0x8e   :  { %319 = vrot.lane.b32.xlu1 %v296_v62, %s829_s9  ;;  %494 = vrot.lane.b32.xlu2 %v296_v62, %s830_s13 }
  0x8f   :  { %373 = vmatpush.msra.mxu0 %v296_v62  ;;  %v148_v63 = vpop.permute.xlu0 %147  ;;  %v217_v0 = vpop.permute.xlu1 %216 }
  0x90   :  { %v138_v1 = vpop.permute.xlu2 %137  ;;  %v172_v2 = vmul.f32 %v989_v50, %v148_v63  ;;  %v231_v9 = vmul.f32 %v997_v55, %v217_v0 }
  0x91   :  { %v170_v35 = vmul.f32 %v989_v50, %v138_v1 }
  0x92   :  { %v180_v10 = vadd.f32 %v172_v2, %v121_v8  ;;  %v239_v13 = vadd.f32 %v231_v9, %v182_v11  ;;  %v579_v8 = vld [vmem:[%s1218_s4] sm:$0xff]  ;;  %v580_v9 = vld [vmem:[%s1218_s4 + $0x8] sm:$0xff] }
  0x93   :  { %v672_v11 = vld [vmem:[#allocation2] sm:$0x1] }
  0x94   :  { %v237_v16 = vadd.f32 %v229_v12, %v180_v10 }
  0x97   :  { %v94_v3 = vpop.permute.xlu0 %93  ;;  %v212_v4 = vpop.permute.xlu1 %211 }
  0x98   :  { %v84_v6 = vpop.permute.xlu2 %83  ;;  %v230_v24 = vmul.f32 %v997_v55, %v212_v4  ;;  %v120_v37 = vmul.f32 %v991_v51, %v94_v3  ;;  %v584_v3 = vld [vmem:[%s1218_s4 + $0x28] sm:$0xff]  ;;  %v582_v4 = vld [vmem:[%s1218_s4 + $0x18] sm:$0xff] }
  0x99   :  { %v118_v47 = vmul.f32 %v991_v51, %v84_v6  ;;  %v581_v6 = vld [vmem:[%s1218_s4 + $0x10] sm:$0xff] }
  0x9a   :  { %v238_v26 = vadd.f32 %v230_v24, %v181_v25  ;;  %v718_v24 = vld [vmem:[%s1217_s3 + $0x50] sm:$0xff] }
  0x9f   :  { %v282_v14 = vpop.permute.xlu0 %281  ;;  %v143_v15 = vpop.permute.xlu1 %142 }
  0xa0   :  { %v295_v17 = vadd.f32 %v282_v14, %v239_v13  ;;  %v272_v18 = vpop.permute.xlu2 %271  ;;  %v171_v34 = vmul.f32 %v989_v50, %v143_v15 }
  0xa1   :  { %v293_v19 = vadd.f32 %v272_v18, %v237_v16 }
  0xa2   :  { %492 = vrot.lane.b32.xlu0 %v295_v17, %s830_s13  ;;  %374 = vmatpush.msra.mxu0 %v295_v17  ;;  %v179_v40 = vadd.f32 %v171_v34, %v120_v37  ;;  %v720_v34 = vld [vmem:[%s1217_s3 + $0x60] sm:$0xff]  ;;  %v721_v37 = vld [vmem:[%s1217_s3 + $0x68] sm:$0xff] }
  0xa3   :  { %488 = vrot.lane.b32.xlu1 %v293_v19, %s830_s13 }
  0xa7   :  { %v202_v20 = vpop.permute.xlu0 %201  ;;  %v89_v21 = vpop.permute.xlu1 %88 }
  0xa8   :  { %v192_v30 = vpop.permute.xlu2 %191  ;;  %v119_v31 = vmul.f32 %v991_v51, %v89_v21  ;;  %v228_v38 = vmul.f32 %v997_v55, %v202_v20  ;;  %v716_v20 = vld [vmem:[%s1217_s3 + $0x40] sm:$0xff]  ;;  %v717_v21 = vld [vmem:[%s1217_s3 + $0x48] sm:$0xff] }
  0xa9   :  { %v226_v56 = vmul.f32 %v997_v55, %v192_v30 }
  0xaa   :  { %317 = vrot.lane.b32.xlu0 %v295_v17, %s829_s9  ;;  %v178_v39 = vadd.f32 %v170_v35, %v119_v31  ;;  %v236_v43 = vadd.f32 %v228_v38, %v179_v40  ;;  %v757_v35 = vld [vmem:[%s1217_s3 + $0x88] sm:$0xff]  ;;  %v758_v38 = vld [vmem:[%s1217_s3 + $0x90] sm:$0xff] }
  0xab   :  { %313 = vrot.lane.b32.xlu1 %v293_v19, %s829_s9  ;;  %v722_v40 = vld [vmem:[%s1217_s3 + $0x70] sm:$0xff] }
  0xaf   :  { %v133_v27 = vpop.permute.xlu0 %132  ;;  %v277_v28 = vpop.permute.xlu1 %276 }
  0xb0   :  { %v294_v29 = vadd.f32 %v277_v28, %v238_v26  ;;  %v169_v42 = vmul.f32 %v989_v50, %v133_v27  ;;  %v262_v49 = vpop.permute.xlu2 %261  ;;  %v719_v28 = vld [vmem:[%s1217_s3 + $0x58] sm:$0xff] }
  0xb2   :  { %490 = vrot.lane.b32.xlu2 %v294_v29, %s830_s13  ;;  %375 = vmatpush.msra.mxu0 %v294_v29  ;;  %v177_v54 = vadd.f32 %v169_v42, %v118_v47  ;;  %v300_v42 = vld [vmem:[%s1217_s3 + $0x18] sm:$0xff]  ;;  %v761_v47 = vld [vmem:[%s1217_s3 + $0xa8] sm:$0xff] }
  0xb4   :  { %376 = vmatpush.msra.mxu0 %v293_v19  ;;  %v234_v59 = vadd.f32 %v226_v56, %v177_v54  ;;  %v763_v54 = vld [vmem:[%s1217_s3 + $0xb8] sm:$0xff] }
  0xb5   :  { %v304_v56 = vld [vmem:[%s1217_s3 + $0x38] sm:$0xff] }
  0xb7   :  { %v79_v32 = vpop.permute.xlu0 %78  ;;  %v197_v33 = vpop.permute.xlu1 %196 }
  0xb8   :  { %v227_v36 = vmul.f32 %v997_v55, %v197_v33  ;;  %v117_v58 = vmul.f32 %v991_v51, %v79_v32  ;;  %v585_v51 = vld [vmem:[%s1218_s4 + $0x30] sm:$0xff]  ;;  %v297_v32 = vld [vmem:[%s1217_s3] sm:$0xff] }
  0xba   :  { %315 = vrot.lane.b32.xlu2 %v294_v29, %s829_s9  ;;  %v235_v41 = vadd.f32 %v227_v36, %v178_v39  ;;  %v756_v29 = vld [vmem:[%s1217_s3 + $0x80] sm:$0xff]  ;;  %v298_v36 = vld [vmem:[%s1217_s3 + $0x8] sm:$0xff]  ;;  %v299_v39 = vld [vmem:[%s1217_s3 + $0x10] sm:$0xff] }
  0xbc   :  { %v291_v53 = vadd.f32 %v262_v49, %v235_v41  ;;  %v759_v41 = vld [vmem:[%s1217_s3 + $0x98] sm:$0xff]  ;;  %v302_v49 = vld [vmem:[%s1217_s3 + $0x28] sm:$0xff] }
  0xbf   :  { %v267_v45 = vpop.permute.xlu0 %266  ;;  %v128_v46 = vpop.permute.xlu1 %127 }
  0xc0   :  { %v292_v52 = vadd.f32 %v267_v45, %v236_v43  ;;  %v168_v57 = vmul.f32 %v989_v50, %v128_v46  ;;  %v723_v43 = vld [vmem:[%s1217_s3 + $0x78] sm:$0xff]  ;;  %v760_v45 = vld [vmem:[%s1217_s3 + $0xa0] sm:$0xff] }
  0xc1   :  { %v301_v46 = vld [vmem:[%s1217_s3 + $0x20] sm:$0xff] }
  0xc2   :  { %486 = vrot.lane.b32.xlu0 %v292_v52, %s830_s13  ;;  %377 = vmatpush.msra.mxu0 %v292_v52  ;;  %v176_v62 = vadd.f32 %v168_v57, %v117_v58 }
  0xc3   :  { %484 = vrot.lane.b32.xlu2 %v291_v53, %s830_s13 }
  0xc4   :  { %378 = vmatpush.msra.mxu0 %v291_v53 }
  0xc7   :  { %v257_v60 = vpop.permute.xlu0 %256  ;;  %v187_v61 = vpop.permute.xlu1 %186 }
  0xc8   :  { %v290_v63 = vadd.f32 %v257_v60, %v234_v59  ;;  %v225_v0 = vmul.f32 %v997_v55, %v187_v61  ;;  %v586_v55 = vld [vmem:[%s1218_s4 + $0x38] sm:$0xff] }
  0xca   :  { %311 = vrot.lane.b32.xlu0 %v292_v52, %s829_s9  ;;  %482 = vrot.lane.b32.xlu1 %v290_v63, %s830_s13  ;;  %v233_v1 = vadd.f32 %v225_v0, %v176_v62  ;;  %v762_v52 = vld [vmem:[%s1217_s3 + $0xb0] sm:$0xff] }
  0xcb   :  { %379 = vmatpush.msra.mxu0 %v290_v63  ;;  %309 = vrot.lane.b32.xlu2 %v291_v53, %s829_s9  ;;  %v303_v53 = vld [vmem:[%s1217_s3 + $0x30] sm:$0xff] }
  0xcf   :  { %v252_v2 = vpop.permute.xlu1 %251 }
  0xd0   :  { %v289_v50 = vadd.f32 %v252_v2, %v233_v1 }
  0xd2   :  { %307 = vrot.lane.b32.xlu1 %v290_v63, %s829_s9  ;;  %480 = vrot.lane.b32.xlu0 %v289_v50, %s830_s13 }
  0xd3   :  { %305 = vrot.lane.b32.xlu2 %v289_v50, %s829_s9  ;;  %380 = vmatpush.msra.mxu0 %v289_v50 }
  0xd4   :  { %724 = vmatmul.msk.f32.vlgmr.msra.gmra.mxu0 %vm340_vm4, %v716_v20 }
  0xda   :  { %619 = vperm.xlu1 %794, %v585_v51   ;;  %624 = vperm.xlu0 %796, %v586_v55  }
  0xdb   :  { %614 = vperm.xlu2 %795, %v584_v3  }
  0xdc   :  { %725 = vmatmul.msk.f32.gmra.mxu0 %vm340_vm4, %v717_v21 }
  0xe2   :  { %604 = vperm.xlu1 %794, %v582_v4   ;;  %609 = vperm.xlu0 %796, %v583_v5  }
  0xe3   :  { %599 = vperm.xlu2 %795, %v581_v6  }
  0xe4   :  { %726 = vmatmul.msk.f32.gmra.mxu0 %vm340_vm4, %v718_v24 }
  0xe8   :  { %v495_v10 = vpop.permute.xlu2 %494 }
  0xe9   :  { %765 = vmatpush.msk.msra.mxu2 %vm1057_vm2, %v495_v10 }
  0xea   :  { %589 = vperm.xlu1 %794, %v579_v8   ;;  %594 = vperm.xlu0 %796, %v580_v9  }
  0xec   :  { %727 = vmatmul.msk.f32.gmra.mxu0 %vm340_vm4, %v719_v28 }
  0xf2   :  { %675 = vperm.xlu1 %794, %v672_v11  }
  0xf4   :  { %728 = vmatmul.msk.f32.gmra.mxu0 %vm340_vm4, %v720_v34 }
  0xfc   :  { %729 = vmatmul.msk.f32.gmra.mxu0 %vm340_vm4, %v721_v37 }
 0x100   :  { %v320_v13 = vpop.permute.xlu1 %319 }
 0x101   :  { %733 = vmatpush.msk.msra.mxu1 %vm1071_vm3, %v320_v13 }
 0x104   :  { %730 = vmatmul.msk.f32.gmra.mxu0 %vm340_vm4, %v722_v40 }
 0x10c   :  { %v491_v14 = vpop.permute.xlu2 %490  ;;  %731 = vmatmul.msk.f32.gmra.mxu0 %vm340_vm4, %v723_v43 }
 0x114   :  { %v493_v15 = vpop.permute.xlu0 %492  ;;  %v316_v18 = vpop.permute.xlu2 %315 }
 0x115   :  { %767 = vmatpush.msk.msra.mxu2 %vm1057_vm2, %v493_v15  ;;  %v489_v16 = vpop.permute.xlu1 %488 }
 0x117   :  { %769 = vmatpush.msk.msra.mxu2 %vm1057_vm2, %v491_v14 }
 0x119   :  { %771 = vmatpush.msk.msra.mxu2 %vm1057_vm2, %v489_v16 }
 0x11c   :  { %v318_v17 = vpop.permute.xlu0 %317 }
 0x11d   :  { %735 = vmatpush.msk.msra.mxu1 %vm1071_vm3, %v318_v17  ;;  %v314_v19 = vpop.permute.xlu1 %313  ;;  %v485_v22 = vpop.permute.xlu2 %484 }
 0x11f   :  { %737 = vmatpush.msk.msra.mxu1 %vm1071_vm3, %v316_v18 }
 0x121   :  { %739 = vmatpush.msk.msra.mxu1 %vm1071_vm3, %v314_v19 }
 0x125   :  { %v310_v25 = vpop.permute.xlu2 %309 }
 0x12d   :  { %v306_v33 = vpop.permute.xlu2 %305 }
 0x134   :  { %v487_v23 = vpop.permute.xlu0 %486 }
 0x135   :  { %773 = vmatpush.msk.msra.mxu2 %vm1057_vm2, %v487_v23  ;;  %v615_v24 = vpop.permute.xlu2 %614 }
 0x137   :  { %775 = vmatpush.msk.msra.mxu2 %vm1057_vm2, %v485_v22 }
 0x13c   :  { %v312_v26 = vpop.permute.xlu0 %311  ;;  %v483_v27 = vpop.permute.xlu1 %482 }
 0x13d   :  { %741 = vmatpush.msk.msra.mxu1 %vm1071_vm3, %v312_v26  ;;  %777 = vmatpush.msk.msra.mxu2 %vm1057_vm2, %v483_v27  ;;  %v600_v40 = vpop.permute.xlu2 %599 }
 0x13f   :  { %743 = vmatpush.msk.msra.mxu1 %vm1071_vm3, %v310_v25 }
 0x144   :  { %v308_v30 = vpop.permute.xlu1 %307  ;;  %v481_v31 = vpop.permute.xlu0 %480 }
 0x145   :  { %745 = vmatpush.msk.msra.mxu1 %vm1071_vm3, %v308_v30  ;;  %779 = vmatpush.msk.msra.mxu2 %vm1057_vm2, %v481_v31 }
 0x146   :  { %780 = vmatmul.msk.f32.vlgmr.msra.gmra.mxu2 %vm340_vm4, %v756_v29 }
 0x147   :  { %747 = vmatpush.msk.msra.mxu1 %vm1071_vm3, %v306_v33 }
 0x148   :  { %748 = vmatmul.msk.f32.vlgmr.msra.gmra.mxu1 %vm340_vm4, %v297_v32 }
 0x14c   :  { %v625_v13 = vpop.permute.xlu0 %624  ;;  %v620_v15 = vpop.permute.xlu1 %619 }
 0x14e   :  { %781 = vmatmul.msk.f32.gmra.mxu2 %vm340_vm4, %v757_v35 }
 0x150   :  { %749 = vmatmul.msk.f32.gmra.mxu1 %vm340_vm4, %v298_v36 }
 0x151   :  { %v382_v57 = vpop.f32.mrf.mxu0 }
 0x154   :  { %v610_v28 = vpop.permute.xlu0 %609  ;;  %v605_v32 = vpop.permute.xlu1 %604 }
 0x156   :  { %782 = vmatmul.msk.f32.gmra.mxu2 %vm340_vm4, %v758_v38 }
 0x158   :  { %750 = vmatmul.msk.f32.gmra.mxu1 %vm340_vm4, %v299_v39 }
 0x159   :  { %v385_v58 = vpop.f32.mrf.mxu0 }
 0x15e   :  { %783 = vmatmul.msk.f32.gmra.mxu2 %vm340_vm4, %v759_v41 }
 0x160   :  { %751 = vmatmul.msk.f32.gmra.mxu1 %vm340_vm4, %v300_v42  ;;  %v595_v42 = vpop.permute.xlu0 %594 }
 0x161   :  { %v388_v62 = vpop.f32.mrf.mxu0 }
 0x166   :  { %784 = vmatmul.msk.f32.gmra.mxu2 %vm340_vm4, %v760_v45  ;;  %v590_v45 = vpop.permute.xlu1 %589 }
 0x168   :  { %752 = vmatmul.msk.f32.gmra.mxu1 %vm340_vm4, %v301_v46 }
 0x169   :  { %v391_v2 = vpop.f32.mrf.mxu0 }
 0x16e   :  { %785 = vmatmul.msk.f32.gmra.mxu2 %vm340_vm4, %v761_v47  ;;  %v635_v47 = vld [vmem:[%s1219_s5] sm:$0x7]  ;;  %s831_s5 = smov [#allocation3]  }
 0x170   :  { %753 = vmatmul.msk.f32.gmra.mxu1 %vm340_vm4, %v302_v49 }
 0x171   :  { %v394_v3 = vpop.f32.mrf.mxu0 }
 0x176   :  { %786 = vmatmul.msk.f32.gmra.mxu2 %vm340_vm4, %v762_v52 }
 0x178   :  { %754 = vmatmul.msk.f32.gmra.mxu1 %vm340_vm4, %v303_v53 }
 0x179   :  { %v397_v6 = vpop.f32.mrf.mxu0 }
 0x17e   :  { %787 = vmatmul.msk.f32.gmra.mxu2 %vm340_vm4, %v763_v54 }
 0x180   :  { %755 = vmatmul.msk.f32.gmra.mxu1 %vm340_vm4, %v304_v56 }
 0x181   :  { %v400_v10 = vpop.f32.mrf.mxu0 }
 0x189   :  { %v403_v14 = vpop.f32.mrf.mxu0 }
 0x1c5   :  { %v447_v59 = vpop.f32.mrf.mxu1 }
 0x1c6   :  { %v448_v60 = vadd.f32 %v447_v59, %v382_v57  ;;  %v676_v57 = vpop.permute.xlu1 %675 }
 0x1c9   :  { %v547_v61 = vpop.f32.mrf.mxu2 }
 0x1ca   :  { %v571_v63 = vadd.f32 %v547_v61, %v448_v60  ;;  %v678_v61 = vperm.slane %v676_v57, 0 }
 0x1cc   :  { %v627_v46 = vadd.f32 %v590_v45, %v571_v63 }
 0x1cd   :  { %v450_v0 = vpop.f32.mrf.mxu1 }
 0x1ce   :  { %v451_v33 = vadd.f32 %v450_v0, %v385_v58 }
 0x1d1   :  { %v550_v1 = vpop.f32.mrf.mxu2 }
 0x1d2   :  { %v572_v38 = vadd.f32 %v550_v1, %v451_v33 }
 0x1d4   :  { %v628_v43 = vadd.f32 %v595_v42, %v572_v38 }
 0x1d5   :  { %v453_v50 = vpop.f32.mrf.mxu1 }
 0x1d6   :  { %v454_v29 = vadd.f32 %v453_v50, %v388_v62 }
 0x1d9   :  { %v553_v51 = vpop.f32.mrf.mxu2 }
 0x1da   :  { %v573_v36 = vadd.f32 %v553_v51, %v454_v29 }
 0x1dc   :  { %v629_v41 = vadd.f32 %v600_v40, %v573_v36 }
 0x1dd   :  { %v456_v55 = vpop.f32.mrf.mxu1 }
 0x1de   :  { %v457_v25 = vadd.f32 %v456_v55, %v391_v2 }
 0x1e1   :  { %v556_v4 = vpop.f32.mrf.mxu2 }
 0x1e2   :  { %v574_v34 = vadd.f32 %v556_v4, %v457_v25 }
 0x1e4   :  { %v630_v39 = vadd.f32 %v605_v32, %v574_v34 }
 0x1e5   :  { %v459_v5 = vpop.f32.mrf.mxu1 }
 0x1e6   :  { %v460_v21 = vadd.f32 %v459_v5, %v394_v3 }
 0x1e9   :  { %v559_v7 = vpop.f32.mrf.mxu2 }
 0x1ea   :  { %v575_v30 = vadd.f32 %v559_v7, %v460_v21 }
 0x1ec   :  { %v631_v37 = vadd.f32 %v610_v28, %v575_v30 }
 0x1ed   :  { %v462_v8 = vpop.f32.mrf.mxu1 }
 0x1ee   :  { %v463_v19 = vadd.f32 %v462_v8, %v397_v6 }
 0x1f1   :  { %v562_v9 = vpop.f32.mrf.mxu2 }
 0x1f2   :  { %v576_v26 = vadd.f32 %v562_v9, %v463_v19 }
 0x1f4   :  { %v632_v35 = vadd.f32 %v615_v24, %v576_v26 }
 0x1f5   :  { %v465_v11 = vpop.f32.mrf.mxu1 }
 0x1f6   :  { %v466_v17 = vadd.f32 %v465_v11, %v400_v10 }
 0x1f9   :  { %v565_v12 = vpop.f32.mrf.mxu2 }
 0x1fa   :  { %v577_v22 = vadd.f32 %v565_v12, %v466_v17 }
 0x1fc   :  { %v633_v31 = vadd.f32 %v620_v15, %v577_v22 }
 0x1fd   :  { %v468_v16 = vpop.f32.mrf.mxu1 }
 0x1fe   :  { %v469_v18 = vadd.f32 %v468_v16, %v403_v14 }
 0x201   :  { %v568_v20 = vpop.f32.mrf.mxu2 }
 0x202   :  { %v578_v23 = vadd.f32 %v568_v20, %v469_v18 }
 0x204   :  { %v634_v27 = vadd.f32 %v625_v13, %v578_v23 }
 0x206   :  { %647 = vmatpush.msra.mxu3 %v634_v27 }
 0x208   :  { %648 = vmatpush.msra.mxu3 %v633_v31 }
 0x20a   :  { %649 = vmatpush.msra.mxu3 %v632_v35 }
 0x20c   :  { %650 = vmatpush.msra.mxu3 %v631_v37 }
 0x20e   :  { %651 = vmatpush.msra.mxu3 %v630_v39 }
 0x210   :  { %652 = vmatpush.msra.mxu3 %v629_v41 }
 0x212   :  { %653 = vmatpush.msra.mxu3 %v628_v43 }
 0x214   :  { %654 = vmatpush.msra.mxu3 %v627_v46 }
 0x215   :  { %788 = vmatmul.msk.f32.vlgmr.msra.gmra.mxu3 %vm340_vm4, %v635_v47 }
 0x298   :  { %v656_v49 = vpop.f32.mrf.mxu3 }
 0x299   :  { %v666_v52 = vrot.slane %v656_v49, 2  ;;  %659 = vrot.lane.b32.xlu2 %v656_v49, %s829_s9  ;;  %v663_v56 = vrot.slane %v656_v49, 1  ;;  %s705_s9 = sshll.u32 %s831_s5, 4  ;;  %s706_s9 = int_to_ptr.vmem [resolvable:$true] %s705_s9 }
 0x29b   :  { %668 = vrot.lane.b32.xlu0 %v666_v52, %s830_s13 }
 0x2f3   :  { %v660_v53 = vpop.permute.xlu2 %659 }
 0x2f4   :  { %v661_v54 = vsel %vm976_vm0, 0.0, %v660_v53 }
 0x2f5   :  { %v665_v58 = vadd.f32 %v663_v56, %v661_v54 }
 0x30d   :  { %v669_v59 = vpop.permute.xlu0 %668 }
 0x30e   :  { %v670_v60 = vsel %vm982_vm1, 0.0, %v669_v59 }
 0x30f   :  { %v671_v62 = vadd.f32 %v670_v60, %v665_v58 }
 0x311   :  { %v679_v63 = vadd.f32 %v678_v61, %v671_v62 }
 0x313   :  { %v789_v0 = vmul.f32 -1.442695, %v679_v63 }
 0x315   :  { %798 = vpow2.f32 %v789_v0 }
 0x31b   :  { %v799_v1 = vpop.eup %798 }
 0x31c   :  { %v683_v2 = vadd.f32 1.0, %v799_v1 }
 0x31e   :  { %800 = vrcp.f32 %v683_v2  ;;  %v695_v44 = vand.u32 2147483648, %v683_v2  ;;  %v693_v4 = vand.u32 2147483647, %v683_v2  ;;  %vm689_vm6 = vweird.f32 %v683_v2 }
 0x320   :  { %v696_v5 = vor.u32 1.1754944e-38, %v695_v44  ;;  %vm694_vm8 = vcmp.eq.f32.partialorder %v693_v4, 8.507059e+37 }
 0x324   :  { %v801_v50 = vpop.eup %800 }
 0x325   :  { %v685_v51 = vmul.f32 %v801_v50, %v683_v2  ;;  %vm690_vm5 = vweird.f32 %v801_v50 }
 0x326   :  { %vm691_vm7 = vmor %vm689_vm6, %vm690_vm5 }
 0x327   :  { %v686_v55 = vsub.f32 1.0, %v685_v51 }
 0x329   :  { %v687_v3 = vmul.f32 %v801_v50, %v686_v55 }
 0x32b   :  { %v688_v48 = vadd.f32 %v801_v50, %v687_v3 }
 0x32d   :  { %v692_v6 = vsel %vm691_vm7, %v801_v50, %v688_v48 }
 0x32e   :  { %v697_v7 = vsel %vm694_vm8, %v696_v5, %v692_v6 }
 0x32f   :  { %699 = vst [vmem:[#allocation3] sm:$0x1] %v697_v7 }
 0x330   :  { %710 = dma.vmem_to_hbm [thread:$0]  %s706_s9, 16, %s708_s17, [#allocation4]  }
 0x331   :  { %826 = dma.done.wait [#allocation4], 16  }
 0x332   :  { %827 = vsyncadd [#allocation4], 4294967280 }
 0x333   :  { %715 = vsyncpa [#allocation4], 1 }

</bundles_post_ra>
